<compile_context>
chip_gen: v5e
topology: v5e:2x2
jax: 0.10.0
libtpu: 0.0.40
codegen_flags: <defaults>
</compile_context>

<pallas_src>
import functools

import jax
import jax.numpy as jnp
from jax.experimental import pallas as pl
from jax.experimental.pallas import tpu as pltpu


def memstream_fwd_kernel(xT_ref, mean_ref, inv_std_ref,
                         w_enc_ref, b_enc_ref, w_dec_ref, b_dec_ref,
                         decT_ref, encT_ref):
    # xT tile: (in_dim, TB) with the batch tile on the lane axis.
    xT = xT_ref[...]

    # Normalization: (x - mean) * inv_std; inv_std is 0 where std == 0, so the
    # "new[:, std == 0] = 0" masking falls out for free (no divide, no selects).
    newT = (xT - mean_ref[...]) * inv_std_ref[...]          # (in_dim, TB)

    # Encoder: Linear(in_dim, out_dim) + Tanh, computed transposed on the MXU.
    encT = jnp.tanh(
        jnp.dot(w_enc_ref[...], newT, preferred_element_type=jnp.float32)
        + b_enc_ref[...]                                     # (out_dim, 1) broadcast
    )                                                        # (out_dim, TB)

    # Decoder: Linear(out_dim, in_dim), transposed.
    decT = (jnp.dot(w_dec_ref[...], encT, preferred_element_type=jnp.float32)
            + b_dec_ref[...])                                # (in_dim, TB)

    encT_ref[...] = encT.astype(encT_ref.dtype)
    decT_ref[...] = decT.astype(decT_ref.dtype)


@functools.partial(jax.jit, static_argnames=("batch_tile",))
def memstream_forward(x, mean, std, w_enc, b_enc, w_dec, b_dec, *, batch_tile=128):
    """MemStream.forward.

    x:     (B, in_dim)          feature-last, same as the PyTorch module input
    w_enc: (out_dim, in_dim)    native nn.Linear(in_dim, out_dim).weight layout
    b_enc: (out_dim,)
    w_dec: (in_dim, out_dim)    native nn.Linear(out_dim, in_dim).weight layout
    b_dec: (in_dim,)
    Returns (dec, enc) with shapes (B, in_dim) and (B, out_dim).
    """
    B, in_dim = x.shape
    out_dim = w_enc.shape[0]

    # inv_std precomputed once (ideally cached alongside the memory statistics in
    # the full MemStream pipeline — it only changes on update_memory()).
    zero_std = std == 0.0
    inv_std = jnp.where(zero_std, 0.0, 1.0 / jnp.where(zero_std, 1.0, std))

    # Batch on the lane axis, padded to a multiple of the lane tile.
    num_tiles = pl.cdiv(B, batch_tile)
    padded_B = num_tiles * batch_tile
    xT = x.T                                                  # (in_dim, B)
    if padded_B != B:
        xT = jnp.pad(xT, ((0, 0), (0, padded_B - B)))

    mean_c = mean.reshape(in_dim, 1).astype(jnp.float32)
    inv_std_c = inv_std.reshape(in_dim, 1).astype(jnp.float32)
    b_enc_c = b_enc.reshape(out_dim, 1).astype(jnp.float32)
    b_dec_c = b_dec.reshape(in_dim, 1).astype(jnp.float32)

    fp32 = jnp.dtype(jnp.float32).itemsize
    cost = pl.CostEstimate(
        flops=4 * padded_B * in_dim * out_dim,                # two matmuls
        transcendentals=padded_B * out_dim,                   # tanh
        bytes_accessed=fp32 * (2 * padded_B * in_dim          # x, dec
                               + padded_B * out_dim           # enc
                               + 2 * in_dim * out_dim         # weights
                               + 3 * in_dim + out_dim),       # mean, inv_std, biases
    )

    grid_spec = pltpu.PrefetchScalarGridSpec(
        num_scalar_prefetch=0,
        grid=(num_tiles,),
        in_specs=[
            pl.BlockSpec((in_dim, batch_tile), lambda i: (0, i)),   # xT tile (moves)
            pl.BlockSpec((in_dim, 1), lambda i: (0, 0)),            # mean (resident)
            pl.BlockSpec((in_dim, 1), lambda i: (0, 0)),            # inv_std (resident)
            pl.BlockSpec((out_dim, in_dim), lambda i: (0, 0)),      # w_enc (resident)
            pl.BlockSpec((out_dim, 1), lambda i: (0, 0)),           # b_enc (resident)
            pl.BlockSpec((in_dim, out_dim), lambda i: (0, 0)),      # w_dec (resident)
            pl.BlockSpec((in_dim, 1), lambda i: (0, 0)),            # b_dec (resident)
        ],
        out_specs=(
            pl.BlockSpec((in_dim, batch_tile), lambda i: (0, i)),   # dec^T tile
            pl.BlockSpec((out_dim, batch_tile), lambda i: (0, i)),  # enc^T tile
        ),
    )

    decT, encT = pl.pallas_call(
        memstream_fwd_kernel,
        out_shape=(
            jax.ShapeDtypeStruct((in_dim, padded_B), jnp.float32),
            jax.ShapeDtypeStruct((out_dim, padded_B), jnp.float32),
        ),
        grid_spec=grid_spec,
        compiler_params=pltpu.CompilerParams(
            dimension_semantics=("parallel",),                 # shards across v7x's 2 TCs
        ),
        cost_estimate=cost,
    )(xT, mean_c, inv_std_c,
      w_enc.astype(jnp.float32), b_enc_c,
      w_dec.astype(jnp.float32), b_dec_c)

    # Layout plumbing back to the module's (B, features) convention.
    dec = decT[:, :B].T
    enc = encT[:, :B].T
    return dec, enc


if __name__ == "__main__":
    # Small shapes consistent with the module: in_dim features, out_dim = 2*in_dim.
    in_dim = 16
    out_dim = 2 * in_dim
    memory_len = 16          # params['memory_len'] (N)
    batch = 200              # exercises both the 128-lane tiling and the pad/slice path

    key = jax.random.PRNGKey(0)
    k_x, k_mem, k_w1, k_b1, k_w2, k_b2 = jax.random.split(key, 6)

    # Deterministic synthetic parameters in native PyTorch nn.Linear layouts.
    bound1 = 1.0 / jnp.sqrt(in_dim)
    w_enc = jax.random.uniform(k_w1, (out_dim, in_dim), jnp.float32, -bound1, bound1)
    b_enc = jax.random.uniform(k_b1, (out_dim,), jnp.float32, -bound1, bound1)
    bound2 = 1.0 / jnp.sqrt(out_dim)
    w_dec = jax.random.uniform(k_w2, (in_dim, out_dim), jnp.float32, -bound2, bound2)
    b_dec = jax.random.uniform(k_b2, (in_dim,), jnp.float32, -bound2, bound2)

    # mem_data ~ randn(memory_len, in_dim); mean/std along dim 0 (unbiased std,
    # matching torch.Tensor.std default).
    mem_data = jax.random.normal(k_mem, (memory_len, in_dim), jnp.float32)
    mean = jnp.mean(mem_data, axis=0)
    std = jnp.std(mem_data, axis=0, ddof=1)

    x = jax.random.normal(k_x, (batch, in_dim), jnp.float32)

    dec_out, enc_out = memstream_forward(x, mean, std, w_enc, b_enc, w_dec, b_dec)
    jax.block_until_ready((dec_out, enc_out))

    # Pure-JAX reference check of the forward semantics.
    zero_std = std == 0.0
    new_ref = jnp.where(zero_std[None, :], 0.0,
                        (x - mean[None, :]) / jnp.where(zero_std, 1.0, std)[None, :])
    enc_ref = jnp.tanh(new_ref @ w_enc.T + b_enc[None, :])
    dec_ref = enc_ref @ w_dec.T + b_dec[None, :]
    assert enc_out.shape == (batch, out_dim) and dec_out.shape == (batch, in_dim)
    assert jnp.allclose(enc_out, enc_ref, atol=1e-5, rtol=1e-5)
    assert jnp.allclose(dec_out, dec_ref, atol=1e-5, rtol=1e-5)

    # TODO(synk): training loop (train_autoencoder), memory update, and the Adam
    # optimizer are host-side stateful control flow and are intentionally not
    # expressed as Pallas kernels here.

    print("KERNEL_OK")
</pallas_src>

<mosaic_0001>
module attributes {stable_mosaic.version = 11 : i64} {
  func.func @memstream_fwd_kernel(%arg0: i32, %arg1: memref<16x128xf32, #tpu.memory_space<vmem>>, %arg2: memref<16x1xf32, #tpu.memory_space<vmem>>, %arg3: memref<16x1xf32, #tpu.memory_space<vmem>>, %arg4: memref<32x16xf32, #tpu.memory_space<vmem>>, %arg5: memref<32x1xf32, #tpu.memory_space<vmem>>, %arg6: memref<16x32xf32, #tpu.memory_space<vmem>>, %arg7: memref<16x1xf32, #tpu.memory_space<vmem>>, %arg8: memref<16x128xf32, #tpu.memory_space<vmem>>, %arg9: memref<32x128xf32, #tpu.memory_space<vmem>>) attributes {dimension_semantics = [#tpu.dimension_semantics<parallel>], iteration_bounds = array<i64: 2>, scalar_prefetch = 0 : i64, scratch_operands = 0 : i64, tpu.core_type = #tpu.core_type<tc>, window_params = [{transform_indices = @transform_0, window_bounds = array<i64: 16, 128>}, {pipeline_mode = #tpu.pipeline_mode<synchronous>, transform_indices = @transform_1, window_bounds = array<i64: 16, 1>}, {pipeline_mode = #tpu.pipeline_mode<synchronous>, transform_indices = @transform_2, window_bounds = array<i64: 16, 1>}, {pipeline_mode = #tpu.pipeline_mode<synchronous>, transform_indices = @transform_3, window_bounds = array<i64: 32, 16>}, {pipeline_mode = #tpu.pipeline_mode<synchronous>, transform_indices = @transform_4, window_bounds = array<i64: 32, 1>}, {pipeline_mode = #tpu.pipeline_mode<synchronous>, transform_indices = @transform_5, window_bounds = array<i64: 16, 32>}, {pipeline_mode = #tpu.pipeline_mode<synchronous>, transform_indices = @transform_6, window_bounds = array<i64: 16, 1>}, {transform_indices = @transform_7, window_bounds = array<i64: 16, 128>}, {transform_indices = @transform_8, window_bounds = array<i64: 32, 128>}]} {
    %c0 = arith.constant 0 : index
    %c0_0 = arith.constant 0 : index
    %0 = vector.load %arg1[%c0, %c0_0] : memref<16x128xf32, #tpu.memory_space<vmem>>, vector<16x128xf32>
    %c0_1 = arith.constant 0 : index
    %c0_2 = arith.constant 0 : index
    %1 = vector.load %arg2[%c0_1, %c0_2] : memref<16x1xf32, #tpu.memory_space<vmem>>, vector<16x1xf32>
    %2 = vector.broadcast %1 : vector<16x1xf32> to vector<16x128xf32>
    %3 = arith.subf %0, %2 : vector<16x128xf32>
    %c0_3 = arith.constant 0 : index
    %c0_4 = arith.constant 0 : index
    %4 = vector.load %arg3[%c0_3, %c0_4] : memref<16x1xf32, #tpu.memory_space<vmem>>, vector<16x1xf32>
    %5 = vector.broadcast %4 : vector<16x1xf32> to vector<16x128xf32>
    %6 = arith.mulf %3, %5 : vector<16x128xf32>
    %c0_5 = arith.constant 0 : index
    %c0_6 = arith.constant 0 : index
    %7 = vector.load %arg4[%c0_5, %c0_6] : memref<32x16xf32, #tpu.memory_space<vmem>>, vector<32x16xf32>
    %cst = arith.constant dense<0.000000e+00> : vector<32x128xf32>
    %8 = tpu.matmul %7, %6, %cst {dimension_numbers = #tpu.dot_dimension_numbers<[1], [0], [0], [1], [0, 0, 1, 1], [], []>} : vector<32x16xf32>, vector<16x128xf32>, vector<32x128xf32> -> vector<32x128xf32>
    %c0_7 = arith.constant 0 : index
    %c0_8 = arith.constant 0 : index
    %9 = vector.load %arg5[%c0_7, %c0_8] : memref<32x1xf32, #tpu.memory_space<vmem>>, vector<32x1xf32>
    %10 = vector.broadcast %9 : vector<32x1xf32> to vector<32x128xf32>
    %11 = arith.addf %8, %10 : vector<32x128xf32>
    %12 = math.tanh %11 : vector<32x128xf32>
    %c0_9 = arith.constant 0 : index
    %c0_10 = arith.constant 0 : index
    %13 = vector.load %arg6[%c0_9, %c0_10] : memref<16x32xf32, #tpu.memory_space<vmem>>, vector<16x32xf32>
    %cst_11 = arith.constant dense<0.000000e+00> : vector<16x128xf32>
    %14 = tpu.matmul %13, %12, %cst_11 {dimension_numbers = #tpu.dot_dimension_numbers<[1], [0], [0], [1], [0, 0, 1, 1], [], []>} : vector<16x32xf32>, vector<32x128xf32>, vector<16x128xf32> -> vector<16x128xf32>
    %c0_12 = arith.constant 0 : index
    %c0_13 = arith.constant 0 : index
    %15 = vector.load %arg7[%c0_12, %c0_13] : memref<16x1xf32, #tpu.memory_space<vmem>>, vector<16x1xf32>
    %16 = vector.broadcast %15 : vector<16x1xf32> to vector<16x128xf32>
    %17 = arith.addf %14, %16 : vector<16x128xf32>
    %c0_14 = arith.constant 0 : index
    %c0_15 = arith.constant 0 : index
    %18 = vector.load %arg9[%c0_14, %c0_15] : memref<32x128xf32, #tpu.memory_space<vmem>>, vector<32x128xf32>
    tpu.vector_store %arg9[%c0_14, %c0_15], %12 {strides = array<i32>} : memref<32x128xf32, #tpu.memory_space<vmem>>, vector<32x128xf32>,
    %c0_16 = arith.constant 0 : index
    %c0_17 = arith.constant 0 : index
    %19 = vector.load %arg8[%c0_16, %c0_17] : memref<16x128xf32, #tpu.memory_space<vmem>>, vector<16x128xf32>
    tpu.vector_store %arg8[%c0_16, %c0_17], %17 {strides = array<i32>} : memref<16x128xf32, #tpu.memory_space<vmem>>, vector<16x128xf32>,
    return
  }
  func.func @transform_0(%arg0: i32) -> (i32, i32) {
    %c0_i32 = arith.constant 0 : i32
    %c0_i32_0 = arith.constant 0 : i32
    return %c0_i32, %arg0 : i32, i32
  }
  func.func @transform_1(%arg0: i32) -> (i32, i32) {
    %c0_i32 = arith.constant 0 : i32
    %c0_i32_0 = arith.constant 0 : i32
    %c0_i32_1 = arith.constant 0 : i32
    return %c0_i32, %c0_i32_0 : i32, i32
  }
  func.func @transform_2(%arg0: i32) -> (i32, i32) {
    %c0_i32 = arith.constant 0 : i32
    %c0_i32_0 = arith.constant 0 : i32
    %c0_i32_1 = arith.constant 0 : i32
    return %c0_i32, %c0_i32_0 : i32, i32
  }
  func.func @transform_3(%arg0: i32) -> (i32, i32) {
    %c0_i32 = arith.constant 0 : i32
    %c0_i32_0 = arith.constant 0 : i32
    %c0_i32_1 = arith.constant 0 : i32
    return %c0_i32, %c0_i32_0 : i32, i32
  }
  func.func @transform_4(%arg0: i32) -> (i32, i32) {
    %c0_i32 = arith.constant 0 : i32
    %c0_i32_0 = arith.constant 0 : i32
    %c0_i32_1 = arith.constant 0 : i32
    return %c0_i32, %c0_i32_0 : i32, i32
  }
  func.func @transform_5(%arg0: i32) -> (i32, i32) {
    %c0_i32 = arith.constant 0 : i32
    %c0_i32_0 = arith.constant 0 : i32
    %c0_i32_1 = arith.constant 0 : i32
    return %c0_i32, %c0_i32_0 : i32, i32
  }
  func.func @transform_6(%arg0: i32) -> (i32, i32) {
    %c0_i32 = arith.constant 0 : i32
    %c0_i32_0 = arith.constant 0 : i32
    %c0_i32_1 = arith.constant 0 : i32
    return %c0_i32, %c0_i32_0 : i32, i32
  }
  func.func @transform_7(%arg0: i32) -> (i32, i32) {
    %c0_i32 = arith.constant 0 : i32
    %c0_i32_0 = arith.constant 0 : i32
    return %c0_i32, %arg0 : i32, i32
  }
  func.func @transform_8(%arg0: i32) -> (i32, i32) {
    %c0_i32 = arith.constant 0 : i32
    %c0_i32_0 = arith.constant 0 : i32
    return %c0_i32, %arg0 : i32, i32
  }
}

</mosaic_0001>

<bundles_post_ra>
// kernel: memstream_forward.1
= control target key start
LH: loop header
LB: loop body
LE: loop exit
PB: predicated region body
PF: predicated region fallthrough
CT: control target
= control target key end

     0   :  { %s818_s27 = smov 0   ;;  %s820_s28 = smov 0   ;;  %s940_s0 = inlined_call_operand.vmem [shape: f32[16,256], index: 0, kind: input, shape index: {}]   ;;  %s941_s1 = inlined_call_operand.vmem [shape: f32[16,1], index: 1, kind: input, shape index: {}]   ;;  %s942_s2 = inlined_call_operand.vmem [shape: f32[16,1], index: 2, kind: input, shape index: {}]   ;;  %s943_s3 = inlined_call_operand.vmem [shape: f32[32,16], index: 3, kind: input, shape index: {}]   ;;  %s944_s4 = inlined_call_operand.vmem [shape: f32[32,1], index: 4, kind: input, shape index: {}]   ;;  %s945_s5 = inlined_call_operand.vmem [shape: f32[16,32], index: 5, kind: input, shape index: {}]   ;;  %s946_s6 = inlined_call_operand.vmem [shape: f32[16,1], index: 6, kind: input, shape index: {}]   ;;  %s947_s7 = inlined_call_operand.vmem [shape: f32[16,256], index: 7, kind: output, shape index: {0}]   ;;  %s948_s8 = inlined_call_operand.vmem [shape: f32[32,256], index: 8, kind: output, shape index: {1}]  }
   0x1   :  { %s822_s29 = smov 0  }
   0x2 LB: > { %s831_s30 = sadd.s32 4294967295, %s770_s29   ;;  %s833_s9 = sadd.s32 1, %s770_s29   ;;  %s770_s29 = sphi %s822_s29, %s952_s29   ;;  %s766_s28 = sphi %s820_s28, %s951_s28   ;;  %s762_s27 = sphi %s818_s27, %s950_s27  }
   0x3   : > { %s23_s10 = ssub.s32 %s770_s29, %s833_s9  ;;  %s26_s11 = sadd.s32 1, %s766_s28 }
   0x4   : > { %p24_p0 = scmp.eq.s32.totalorder %s23_s10, 0  ;;  %p33_p1 = scmp.ne.s32.totalorder %s766_s28, %s762_s27 }
   0x5   : > { %p34_p2 = scmp.eq.s32.totalorder %s770_s29, 0  ;;  %p189_p3 = scmp.eq.s32.totalorder %s831_s30, 1 }
   0x6   : > { %s841_s12 = scalar_select %p24_p0, %s766_s28, %s26_s11  }
   0x7   : > { %p35_p4 = por %p34_p2, %p33_p1  ;;  %p843_p5 = por %p189_p3, %p33_p1 }
   0x8   : > { %p687_p6 = scmp.ge.s32.totalorder %s770_s29, 2 }
   0xa   : > { %255 = sbr.rel (%p687_p6) target bundleno = 21 (0x15), region = 40 }
   0xf   : > { %258 = sbr.rel (!%p35_p4) target bundleno = 21 (0x15), region = 44  ;;  %s260_s14 = sand.u32 (%p35_p4), 1, %s766_s28  }
  0x10   : > { %s689_s15 = sshll.u32 (%p35_p4), %s770_s29, 3  ;;  %s688_s16 = sshll.u32 (%p35_p4), %s260_s14, 4 }
  0x11   : > { %s264_s19 = scalar_lea.vmem (%p35_p4), %s940_s0, %s689_s15  ;;  %s262_s20 = scalar_lea.vmem (%p35_p4), [#allocation2], %s688_s16 }
  0x12   : > { %v295_v0 = vld [vmem:[%s264_s19] sm:$0xff] (%p35_p4)  ;;  %v297_v1 = vld [vmem:[%s264_s19 + $0x10] sm:$0xff] (%p35_p4) }
  0x13   : > { %296 = vst [vmem:[%s262_s20] sm:$0xff] (%p35_p4), %v295_v0 }
  0x14   : > { %298 = vst [vmem:[%s262_s20 + $0x8] sm:$0xff] %v297_v1 }
  0x15 PF: > { %p690_p7 = scmp.ge.s32.totalorder %s770_s29, 1  ;;  %p303_p8 = scmp.lt.s32.totalorder %s770_s29, 3 }
  0x17   : > { %p304_p9 = pnand %p690_p7, %p303_p8 }
  0x18   : > { %s310_s19 = sand.u32 (!%p304_p9), 1, %s762_s27  }
  0x19   : > { %307 = sbr.rel (%p304_p9) target bundleno = 465 (0x1d1), region = 82  ;;  %s875_s20 = sshll.u32 (!%p304_p9), %s310_s19, 4 }
  0x1a   : > { %s312_s23 = scalar_lea.vmem (!%p304_p9), [#allocation2], %s875_s20  ;;  %s693_s22 = sshll.u32 (!%p304_p9), %s310_s19, 5 }
  0x1b   : > { %s339_s26 = scalar_lea.vmem (!%p304_p9), [#allocation3], %s875_s20 }
  0x1e   : > { %v363_v2 = vld [vmem:[%s942_s2 + $0x8] sm:$0xff]  ;;  %v772_v4 = vmov 0   ;;  %v362_v5 = vld [vmem:[%s942_s2] sm:$0xff]  ;;  %v383_v10 = vld [vmem:[%s944_s4 + $0x18] sm:$0xff]  ;;  %vm404_vm0 = vcmask 130048   ;;  %vm464_vm1 = vcmask 261120  }
  0x1f   : > { %v349_v3 = vld [vmem:[%s941_s1 + $0x8] sm:$0xff]  ;;  %738 = vset.pattern.permute.xlu1 %v772_v4  ;;  %737 = vset.pattern.permute.xlu0 %v772_v4  ;;  %v348_v6 = vld [vmem:[%s941_s1] sm:$0xff]  ;;  %v382_v12 = vld [vmem:[%s944_s4 + $0x10] sm:$0xff]  ;;  %s702_s29 = sshll.u32 (%p843_p5), %s831_s30, 3 }
  0x20   : > { %371 = vperm.xlu1 %738, %v363_v2   ;;  %357 = vperm.xlu0 %737, %v349_v3   ;;  %v380_v7 = vld [vmem:[%s944_s4] sm:$0xff]  ;;  %v381_v8 = vld [vmem:[%s944_s4 + $0x8] sm:$0xff]  ;;  %v378_v24 = vld [vmem:[%s943_s3 + $0x10] sm:$0xff]  ;;  %s512_s14 = scalar_lea.vmem (%p843_p5), %s947_s7, %s702_s29 }
  0x21   : > { %739 = vset.pattern.permute.xlu2 %v772_v4  ;;  %v453_v9 = vld [vmem:[%s946_s6 + $0x8] sm:$0xff]  ;;  %v346_v17 = vld [vmem:[%s312_s23] sm:$0xff]  ;;  %v379_v26 = vld [vmem:[%s943_s3 + $0x18] sm:$0xff] }
  0x22   : > { %401 = vperm.xlu2 %739, %v383_v10   ;;  %v347_v11 = vld [vmem:[%s312_s23 + $0x8] sm:$0xff]  ;;  %v452_v18 = vld [vmem:[%s946_s6] sm:$0xff]  ;;  %s901_s23 = scalar_lea.vmem [#allocation4], %s693_s22 }
  0x23   : > { %v376_v23 = vld [vmem:[%s943_s3] sm:$0xff]  ;;  %v377_v25 = vld [vmem:[%s943_s3 + $0x8] sm:$0xff] }
  0x24   : > { %v450_v43 = vld [vmem:[%s945_s5] sm:$0xff]  ;;  %v451_v44 = vld [vmem:[%s945_s5 + $0x8] sm:$0xff] }
  0x28   : > { %366 = vperm.xlu1 %738, %v362_v5   ;;  %352 = vperm.xlu0 %737, %v348_v6  }
  0x2a   : > { %396 = vperm.xlu2 %739, %v382_v12  }
  0x30   : > { %386 = vperm.xlu1 %738, %v380_v7   ;;  %391 = vperm.xlu0 %737, %v381_v8  }
  0x32   : > { %456 = vperm.xlu2 %739, %v452_v18  }
  0x38   : > { %461 = vperm.xlu0 %737, %v453_v9  }
  0x7c   : > { %v402_v27 = vpop.permute.xlu2 %401 }
  0x84   : > { %v397_v31 = vpop.permute.xlu2 %396 }
  0x8c   : > { %v457_v45 = vpop.permute.xlu2 %456 }
  0x92   : > { %v372_v13 = vpop.permute.xlu1 %371  ;;  %v358_v14 = vpop.permute.xlu0 %357 }
  0x93   : > { %v361_v15 = vsub.f32 %v347_v11, %v358_v14 }
  0x95   : > { %v375_v16 = vmul.f32 %v372_v13, %v361_v15 }
  0x97   : > { %431 = vmatpush.msra.mxu0 %v375_v16  ;;  %706 = vmatpush.msra.mxu2 %v375_v16 }
  0x9a   : > { %v353_v19 = vpop.permute.xlu0 %352  ;;  %v367_v21 = vpop.permute.xlu1 %366 }
  0x9b   : > { %v360_v20 = vsub.f32 %v346_v17, %v353_v19 }
  0x9d   : > { %v374_v22 = vmul.f32 %v367_v21, %v360_v20 }
  0x9f   : > { %432 = vmatpush.msra.mxu0 %v374_v22  ;;  %707 = vmatpush.msra.mxu2 %v374_v22 }
  0xa0   : > { %694 = vmatmul.msk.f32.vlgmr.msra.gmra.mxu0 %vm404_vm0, %v376_v23  ;;  %696 = vmatmul.msk.f32.vlgmr.msra.gmra.mxu2 %vm404_vm0, %v378_v24 }
  0xa2   : > { %v387_v28 = vpop.permute.xlu1 %386  ;;  %v392_v34 = vpop.permute.xlu0 %391 }
  0xa8   : > { %695 = vmatmul.msk.f32.gmra.mxu0 %vm404_vm0, %v377_v25  ;;  %697 = vmatmul.msk.f32.gmra.mxu2 %vm404_vm0, %v379_v26 }
  0xaa   : > { %v462_v48 = vpop.permute.xlu0 %461 }
 0x11d   : > { %v434_v29 = vpop.f32.mrf.mxu0 }
 0x11e   : > { %v435_v30 = vadd.f32 %v434_v29, %v387_v28 }
 0x120   : > { %740 = vtanh.f32 %v435_v30 }
 0x123   : > { %v440_v32 = vpop.f32.mrf.mxu2 }
 0x124   : > { %v441_v33 = vadd.f32 %v440_v32, %v397_v31 }
 0x125   : > { %v437_v35 = vpop.f32.mrf.mxu0 }
 0x126   : > { %v741_v36 = vpop.eup %740  ;;  %742 = vtanh.f32 %v441_v33  ;;  %v438_v37 = vadd.f32 %v437_v35, %v392_v34 }
 0x127   : > { %494 = vst [vmem:[%s901_s23] sm:$0xff] %v741_v36 }
 0x128   : > { %744 = vtanh.f32 %v438_v37 }
 0x12b   : > { %v443_v38 = vpop.f32.mrf.mxu2 }
 0x12c   : > { %v743_v39 = vpop.eup %742  ;;  %v444_v40 = vadd.f32 %v443_v38, %v402_v27 }
 0x12d   : > { %496 = vst [vmem:[%s901_s23 + $0x10] sm:$0xff] %v743_v39 }
 0x12e   : > { %v745_v41 = vpop.eup %744  ;;  %746 = vtanh.f32 %v444_v40 }
 0x12f   : > { %495 = vst [vmem:[%s901_s23 + $0x8] sm:$0xff] %v745_v41 }
 0x134   : > { %v747_v42 = vpop.eup %746 }
 0x135   : > { %497 = vst [vmem:[%s901_s23 + $0x18] sm:$0xff] %v747_v42  ;;  %483 = vmatpush.msra.mxu1 %v747_v42  ;;  %708 = vmatpush.msra.mxu3 %v747_v42 }
 0x137   : > { %484 = vmatpush.msra.mxu1 %v743_v39  ;;  %709 = vmatpush.msra.mxu3 %v743_v39 }
 0x139   : > { %485 = vmatpush.msra.mxu1 %v745_v41  ;;  %710 = vmatpush.msra.mxu3 %v745_v41 }
 0x13b   : > { %486 = vmatpush.msra.mxu1 %v741_v36  ;;  %711 = vmatpush.msra.mxu3 %v741_v36 }
 0x13c   : > { %698 = vmatmul.msk.f32.vlgmr.msra.gmra.mxu1 %vm464_vm1, %v450_v43  ;;  %699 = vmatmul.msk.f32.vlgmr.msra.gmra.mxu3 %vm464_vm1, %v451_v44 }
 0x1b9   : > { %v488_v46 = vpop.f32.mrf.mxu1 }
 0x1ba   : > { %v489_v47 = vadd.f32 %v488_v46, %v457_v45 }
 0x1bc   : > { %498 = vst [vmem:[%s339_s26] sm:$0xff] %v489_v47 }
 0x1be   : > { %510 = sbr.rel (!%p843_p5) target bundleno = 459 (0x1cb), region = 90 }
 0x1bf   : > { %v491_v49 = vpop.f32.mrf.mxu3 }
 0x1c0   : > { %v492_v50 = vadd.f32 %v491_v49, %v462_v48 }
 0x1c2   : > { %499 = vst [vmem:[%s339_s26 + $0x8] sm:$0xff] %v492_v50 }
 0x1c3   : > { %v543_v51 = vld [vmem:[%s339_s26] sm:$0xff] }
 0x1c4   : > { %544 = vst [vmem:[%s512_s14] sm:$0xff] %v543_v51 }
 0x1c9   : > { %v545_v52 = vld [vmem:[%s339_s26 + $0x8] sm:$0xff] }
 0x1ca   : > { %546 = vst [vmem:[%s512_s14 + $0x10] sm:$0xff] %v545_v52 }
 0x1cb PF: > { %552 = sbr.rel (!%p843_p5) target bundleno = 465 (0x1d1), region = 128  ;;  %s703_s20 = sshll.u32 (%p843_p5), %s831_s30, 3  ;;  %v589_v53 = vld [vmem:[%s901_s23] sm:$0xff] (%p843_p5)  ;;  %v591_v54 = vld [vmem:[%s901_s23 + $0x8] sm:$0xff] (%p843_p5)  ;;  %v593_v55 = vld [vmem:[%s901_s23 + $0x10] sm:$0xff] (%p843_p5) }
 0x1cc   : > { %s554_s17 = scalar_lea.vmem (%p843_p5), %s948_s8, %s703_s20  ;;  %v595_v56 = vld [vmem:[%s901_s23 + $0x18] sm:$0xff] (%p843_p5) }
 0x1cd   : > { %590 = vst [vmem:[%s554_s17] sm:$0xff] (%p843_p5), %v589_v53 }
 0x1ce   : > { %592 = vst [vmem:[%s554_s17 + $0x10] sm:$0xff] (%p843_p5), %v591_v54 }
 0x1cf   : > { %594 = vst [vmem:[%s554_s17 + $0x20] sm:$0xff] (%p843_p5), %v593_v55 }
 0x1d0   : > { %596 = vst [vmem:[%s554_s17 + $0x30] sm:$0xff] %v595_v56 }
 0x1d1 PF: > { %p16_p10 = scmp.ge.s32.totalorder %s833_s9, 4   ;;  %s950_s27 = smov %s766_s28 }
 0x1d2   : > { %s951_s28 = smov %s841_s12  ;;  %s952_s29 = smov %s833_s9 }
 0x1d3   :  { %18 = sbr.rel (!%p16_p10) target bundleno = 2 (0x2), region = 209 }

</bundles_post_ra>
